<compile_context>
chip_gen: v5e
topology: v5e:2x2
jax: 0.10.0
libtpu: 0.0.40
codegen_flags: <defaults>
</compile_context>

<pallas_src>
import functools
import math

import jax
import jax.numpy as jnp
from jax.experimental import pallas as pl
from jax.experimental.pallas import tpu as pltpu

_GELU_C = math.sqrt(2.0 / math.pi)
_SUBLANE = 8


def _gelu_new(x):
    return 0.5 * x * (1.0 + jnp.tanh(_GELU_C * (x + 0.044715 * x * x * x)))


def _round_up(n, m):
    return ((n + m - 1) // m) * m


def _mlp2_kernel(x_ref, w1_ref, b1_ref, w2_ref, b2_ref, o_ref):
    # x: [TB, F] f32   w1: [F, P] f32   b1: [1, P] f32
    # w2: [P, D] f32   b2: [1, D] f32   o: [TB, D] f32
    # bf16 MXU operands, f32 accumulation (preferred_element_type).
    x = x_ref[...].astype(jnp.bfloat16)
    w1 = w1_ref[...].astype(jnp.bfloat16)
    h = jnp.dot(x, w1, preferred_element_type=jnp.float32)
    h = h + b1_ref[...]
    h = _gelu_new(h)                                   # tanh -> EUP (free slot)
    w2 = w2_ref[...].astype(jnp.bfloat16)
    y = jnp.dot(h.astype(jnp.bfloat16), w2, preferred_element_type=jnp.float32)
    y = y + b2_ref[...]
    # TODO(synk): nn.Dropout applied in inference mode (identity); training-mode
    # stochastic dropout would use pltpu.prng_seed + pltpu.stateful_bernoulli
    # scaled by 1/(1-p).
    o_ref[...] = y.astype(o_ref.dtype)


@functools.partial(jax.jit, static_argnames=("block_b",))
def language_mlp2(lang_vector, w1, b1, w2, b2, *, block_b=4096):
    """lang_vector: [B, F] f32.  w1: [F, P], b1: [P]/[1,P], w2: [P, D], b2: [D]/[1,D].

    Returns [B, D] f32.  Weights are stored pre-transposed as [in, out] so the
    kernel does plain row-major matmuls with no in-kernel transpose.
    """
    B, F = lang_vector.shape
    P = w1.shape[1]
    D = w2.shape[1]

    b1 = b1.reshape(1, P)
    b2 = b2.reshape(1, D)

    # Batch tile: sublane multiple, capped at block_b.  When B is large enough,
    # also cap at ceil(B/2) (rounded to 8) so the "parallel" batch axis gives at
    # least two grid steps -> both v7x TensorCores get work.  The last grid step
    # may be ragged; Pallas masks it.
    TB = min(block_b, _round_up(B, _SUBLANE))
    if B >= 2 * _SUBLANE:
        TB = min(TB, _round_up(-(-B // 2), _SUBLANE))
    grid = (pl.cdiv(B, TB),)

    cost = pl.CostEstimate(
        flops=2 * B * (F * P + P * D),
        transcendentals=B * P,
        bytes_accessed=4 * (B * F + B * D + F * P + P + P * D + D),
    )

    out = pl.pallas_call(
        _mlp2_kernel,
        out_shape=jax.ShapeDtypeStruct((B, D), jnp.float32),
        grid_spec=pltpu.PrefetchScalarGridSpec(
            num_scalar_prefetch=0,
            grid=grid,
            in_specs=[
                pl.BlockSpec((TB, F), lambda i: (i, 0)),  # x tile (pipelined)
                pl.BlockSpec((F, P), lambda i: (0, 0)),   # w1 (VMEM-resident)
                pl.BlockSpec((1, P), lambda i: (0, 0)),   # b1 (VMEM-resident)
                pl.BlockSpec((P, D), lambda i: (0, 0)),   # w2 (VMEM-resident)
                pl.BlockSpec((1, D), lambda i: (0, 0)),   # b2 (VMEM-resident)
            ],
            out_specs=pl.BlockSpec((TB, D), lambda i: (i, 0)),
        ),
        compiler_params=pltpu.CompilerParams(
            dimension_semantics=("parallel",),
        ),
        cost_estimate=cost,
    )(lang_vector, w1, b1, w2, b2)

    return out


def _reference(lang_vector, w1, b1, w2, b2):
    h = lang_vector @ w1 + b1
    h = _gelu_new(h)
    return h @ w2 + b2


if __name__ == "__main__":
    # Small shapes consistent with the module's constructor:
    #   num_language_features=32, nl_project=64, low_rank_dim=32, batch=8
    B, F, P, D = 8, 32, 64, 32

    key = jax.random.PRNGKey(0)
    kx, kw1, kb1, kw2, kb2 = jax.random.split(key, 5)

    lang_vector = jax.random.normal(kx, (B, F), dtype=jnp.float32)

    # Deterministic parameter init (nn.Linear-style uniform bounds), stored as [in, out].
    bound1 = 1.0 / math.sqrt(F)
    w1 = jax.random.uniform(kw1, (F, P), jnp.float32, -bound1, bound1)
    b1 = jax.random.uniform(kb1, (P,), jnp.float32, -bound1, bound1)
    bound2 = 1.0 / math.sqrt(P)
    w2 = jax.random.uniform(kw2, (P, D), jnp.float32, -bound2, bound2)
    b2 = jax.random.uniform(kb2, (D,), jnp.float32, -bound2, bound2)

    # Tolerances account for bf16 MXU operands (f32 accumulation) in the kernel.
    TOL = dict(atol=3e-2, rtol=3e-2)

    out = jax.block_until_ready(language_mlp2(lang_vector, w1, b1, w2, b2))
    ref = _reference(lang_vector, w1, b1.reshape(1, P), w2, b2.reshape(1, D))
    assert out.shape == (B, D)
    assert jnp.allclose(out, ref, **TOL), "mismatch vs reference (small batch)"

    # Larger, non-tile-aligned batch exercising the multi-tile ragged gridded path
    # (B=1000 -> TB=504, grid=2, last block ragged by 8 rows).
    B2 = 1000
    x2 = jax.random.normal(jax.random.PRNGKey(1), (B2, F), dtype=jnp.float32)
    out2 = jax.block_until_ready(language_mlp2(x2, w1, b1, w2, b2))
    ref2 = _reference(x2, w1, b1.reshape(1, P), w2, b2.reshape(1, D))
    assert out2.shape == (B2, D)
    assert jnp.allclose(out2, ref2, **TOL), "mismatch vs reference (gridded batch)"

    print("KERNEL_OK")
</pallas_src>

<mosaic_0001>
module attributes {stable_mosaic.version = 11 : i64} {
  func.func @_mlp2_kernel(%arg0: i32, %arg1: memref<8x32xf32, #tpu.memory_space<vmem>>, %arg2: memref<32x64xf32, #tpu.memory_space<vmem>>, %arg3: memref<1x64xf32, #tpu.memory_space<vmem>>, %arg4: memref<64x32xf32, #tpu.memory_space<vmem>>, %arg5: memref<1x32xf32, #tpu.memory_space<vmem>>, %arg6: memref<8x32xf32, #tpu.memory_space<vmem>>) attributes {dimension_semantics = [#tpu.dimension_semantics<parallel>], iteration_bounds = array<i64: 1>, scalar_prefetch = 0 : i64, scratch_operands = 0 : i64, tpu.core_type = #tpu.core_type<tc>, window_params = [{transform_indices = @transform_0, window_bounds = array<i64: 8, 32>}, {pipeline_mode = #tpu.pipeline_mode<synchronous>, transform_indices = @transform_1, window_bounds = array<i64: 32, 64>}, {pipeline_mode = #tpu.pipeline_mode<synchronous>, transform_indices = @transform_2, window_bounds = array<i64: 1, 64>}, {pipeline_mode = #tpu.pipeline_mode<synchronous>, transform_indices = @transform_3, window_bounds = array<i64: 64, 32>}, {pipeline_mode = #tpu.pipeline_mode<synchronous>, transform_indices = @transform_4, window_bounds = array<i64: 1, 32>}, {transform_indices = @transform_5, window_bounds = array<i64: 8, 32>}]} {
    %c0 = arith.constant 0 : index
    %c0_0 = arith.constant 0 : index
    %0 = vector.load %arg1[%c0, %c0_0] : memref<8x32xf32, #tpu.memory_space<vmem>>, vector<8x32xf32>
    %1 = arith.truncf %0 : vector<8x32xf32> to vector<8x32xbf16>
    %c0_1 = arith.constant 0 : index
    %c0_2 = arith.constant 0 : index
    %2 = vector.load %arg2[%c0_1, %c0_2] : memref<32x64xf32, #tpu.memory_space<vmem>>, vector<32x64xf32>
    %3 = arith.truncf %2 : vector<32x64xf32> to vector<32x64xbf16>
    %cst = arith.constant dense<0.000000e+00> : vector<8x64xf32>
    %4 = tpu.matmul %1, %3, %cst {dimension_numbers = #tpu.dot_dimension_numbers<[1], [0], [0], [1], [0, 0, 1, 1], [], []>} : vector<8x32xbf16>, vector<32x64xbf16>, vector<8x64xf32> -> vector<8x64xf32>
    %c0_3 = arith.constant 0 : index
    %c0_4 = arith.constant 0 : index
    %5 = vector.load %arg3[%c0_3, %c0_4] : memref<1x64xf32, #tpu.memory_space<vmem>>, vector<1x64xf32>
    %6 = vector.broadcast %5 : vector<1x64xf32> to vector<8x64xf32>
    %7 = arith.addf %4, %6 : vector<8x64xf32>
    %cst_5 = arith.constant 5.000000e-01 : f32
    %8 = vector.broadcast %cst_5 : f32 to vector<8x64xf32>
    %9 = arith.mulf %8, %7 : vector<8x64xf32>
    %cst_6 = arith.constant 4.471500e-02 : f32
    %10 = vector.broadcast %cst_6 : f32 to vector<8x64xf32>
    %11 = arith.mulf %10, %7 : vector<8x64xf32>
    %12 = arith.mulf %11, %7 : vector<8x64xf32>
    %13 = arith.mulf %12, %7 : vector<8x64xf32>
    %14 = arith.addf %7, %13 : vector<8x64xf32>
    %cst_7 = arith.constant 0.797884583 : f32
    %15 = vector.broadcast %cst_7 : f32 to vector<8x64xf32>
    %16 = arith.mulf %15, %14 : vector<8x64xf32>
    %17 = math.tanh %16 : vector<8x64xf32>
    %cst_8 = arith.constant 1.000000e+00 : f32
    %18 = vector.broadcast %cst_8 : f32 to vector<8x64xf32>
    %19 = arith.addf %18, %17 : vector<8x64xf32>
    %20 = arith.mulf %9, %19 : vector<8x64xf32>
    %c0_9 = arith.constant 0 : index
    %c0_10 = arith.constant 0 : index
    %21 = vector.load %arg4[%c0_9, %c0_10] : memref<64x32xf32, #tpu.memory_space<vmem>>, vector<64x32xf32>
    %22 = arith.truncf %21 : vector<64x32xf32> to vector<64x32xbf16>
    %23 = arith.truncf %20 : vector<8x64xf32> to vector<8x64xbf16>
    %cst_11 = arith.constant dense<0.000000e+00> : vector<8x32xf32>
    %24 = tpu.matmul %23, %22, %cst_11 {dimension_numbers = #tpu.dot_dimension_numbers<[1], [0], [0], [1], [0, 0, 1, 1], [], []>} : vector<8x64xbf16>, vector<64x32xbf16>, vector<8x32xf32> -> vector<8x32xf32>
    %c0_12 = arith.constant 0 : index
    %c0_13 = arith.constant 0 : index
    %25 = vector.load %arg5[%c0_12, %c0_13] : memref<1x32xf32, #tpu.memory_space<vmem>>, vector<1x32xf32>
    %26 = vector.broadcast %25 : vector<1x32xf32> to vector<8x32xf32>
    %27 = arith.addf %24, %26 : vector<8x32xf32>
    %c0_14 = arith.constant 0 : index
    %c0_15 = arith.constant 0 : index
    %28 = vector.load %arg6[%c0_14, %c0_15] : memref<8x32xf32, #tpu.memory_space<vmem>>, vector<8x32xf32>
    tpu.vector_store %arg6[%c0_14, %c0_15], %27 {strides = array<i32>} : memref<8x32xf32, #tpu.memory_space<vmem>>, vector<8x32xf32>,
    return
  }
  func.func @transform_0(%arg0: i32) -> (i32, i32) {
    %c0_i32 = arith.constant 0 : i32
    %c0_i32_0 = arith.constant 0 : i32
    return %arg0, %c0_i32 : i32, i32
  }
  func.func @transform_1(%arg0: i32) -> (i32, i32) {
    %c0_i32 = arith.constant 0 : i32
    %c0_i32_0 = arith.constant 0 : i32
    %c0_i32_1 = arith.constant 0 : i32
    return %c0_i32, %c0_i32_0 : i32, i32
  }
  func.func @transform_2(%arg0: i32) -> (i32, i32) {
    %c0_i32 = arith.constant 0 : i32
    %c0_i32_0 = arith.constant 0 : i32
    %c0_i32_1 = arith.constant 0 : i32
    return %c0_i32, %c0_i32_0 : i32, i32
  }
  func.func @transform_3(%arg0: i32) -> (i32, i32) {
    %c0_i32 = arith.constant 0 : i32
    %c0_i32_0 = arith.constant 0 : i32
    %c0_i32_1 = arith.constant 0 : i32
    return %c0_i32, %c0_i32_0 : i32, i32
  }
  func.func @transform_4(%arg0: i32) -> (i32, i32) {
    %c0_i32 = arith.constant 0 : i32
    %c0_i32_0 = arith.constant 0 : i32
    %c0_i32_1 = arith.constant 0 : i32
    return %c0_i32, %c0_i32_0 : i32, i32
  }
  func.func @transform_5(%arg0: i32) -> (i32, i32) {
    %c0_i32 = arith.constant 0 : i32
    %c0_i32_0 = arith.constant 0 : i32
    return %arg0, %c0_i32 : i32, i32
  }
}

</mosaic_0001>

<bundles_post_ra>
// kernel: language_mlp2.1
= control target key start
LH: loop header
LB: loop body
LE: loop exit
PB: predicated region body
PF: predicated region fallthrough
CT: control target
= control target key end

     0   :  { %s225_s0 = inlined_call_operand.vmem [shape: f32[8,32], index: 0, kind: input, shape index: {}]   ;;  %s226_s1 = inlined_call_operand.vmem [shape: f32[32,64], index: 1, kind: input, shape index: {}]   ;;  %s227_s2 = inlined_call_operand.vmem [shape: f32[1,64], index: 2, kind: input, shape index: {}]   ;;  %s228_s3 = inlined_call_operand.vmem [shape: f32[64,32], index: 3, kind: input, shape index: {}]   ;;  %s229_s4 = inlined_call_operand.vmem [shape: f32[1,32], index: 4, kind: input, shape index: {}]   ;;  %s230_s5 = inlined_call_operand.hbm [shape: f32[8,32], index: 5, kind: output, shape index: {}]  }
   0x1   :  { %v26_v0 = vld [vmem:[%s226_s1 + $0x10] sm:$0xff]  ;;  %v27_v1 = vld [vmem:[%s226_s1 + $0x18] sm:$0xff]  ;;  %v24_v2 = vld [vmem:[%s226_s1] sm:$0xff] }
   0x2   :  { %v29_v3 = vpack.c.bf16 %v27_v1, %v26_v0  ;;  %v25_v4 = vld [vmem:[%s226_s1 + $0x8] sm:$0xff] }
   0x3   :  { %10 = vsyncpa [#allocation3], 0  ;;  %v28_v5 = vpack.c.bf16 %v25_v4, %v24_v2  ;;  %v22_v6 = vld [vmem:[%s225_s0] sm:$0xff]  ;;  %vm34_vm0 = vcmask 261120   ;;  %v66_v8 = vld [vmem:[%s228_s3 + $0x30] sm:$0xff]  ;;  %vm77_vm1 = vcmask 523264  }
   0x4   :  { %44 = vmatpush.bf16.msra.mxu0 %v29_v3  ;;  %v23_v7 = vpack.c.bf16 %v22_v6, %v22_v6  ;;  %v67_v9 = vld [vmem:[%s228_s3 + $0x38] sm:$0xff]  ;;  %v64_v10 = vld [vmem:[%s228_s3 + $0x20] sm:$0xff]  ;;  %v65_v12 = vld [vmem:[%s228_s3 + $0x28] sm:$0xff]  ;;  %s102_s23 = sshll.u32 %s230_s5, 4  ;;  %s103_s23 = int_to_ptr.hbm [resolvable:$true] %s102_s23 }
   0x5   :  { %v71_v11 = vpack.c.bf16 %v67_v9, %v66_v8  ;;  %v70_v13 = vpack.c.bf16 %v65_v12, %v64_v10  ;;  %v62_v14 = vld [vmem:[%s228_s3 + $0x10] sm:$0xff]  ;;  %v63_v15 = vld [vmem:[%s228_s3 + $0x18] sm:$0xff]  ;;  %v60_v17 = vld [vmem:[%s228_s3] sm:$0xff] }
   0x6   :  { %v69_v16 = vpack.c.bf16 %v63_v15, %v62_v14  ;;  %v61_v18 = vld [vmem:[%s228_s3 + $0x8] sm:$0xff]  ;;  %v114_v20 = vld [vmem:[%s227_s2] ss:$0 sm:$0xff]  ;;  %s144_s2 = smov [#allocation2]  }
   0x7   :  { %85 = vmatpush.bf16.msra.mxu1 %v71_v11  ;;  %v68_v19 = vpack.c.bf16 %v61_v18, %v60_v17  ;;  %v115_v34 = vld [vmem:[%s229_s4] ss:$0 sm:$0xff]  ;;  %s100_s20 = sshll.u32 %s144_s2, 4  ;;  %s101_s20 = int_to_ptr.vmem [resolvable:$true] %s100_s20 }
   0x8   :  { %45 = vmatpush.bf16.msra.mxu0 %v28_v5 }
   0xb   :  { %111 = vmatmul.msk.bf16.vlgmr.msra.gmra.mxu0 %vm34_vm0, %v23_v7  ;;  %86 = vmatpush.bf16.msra.mxu1 %v70_v13 }
   0xf   :  { %87 = vmatpush.bf16.msra.mxu1 %v69_v16 }
  0x13   :  { %88 = vmatpush.bf16.msra.mxu1 %v68_v19 }
  0x88   :  { %v47_v21 = vpop.f32.mrf.mxu0 }
  0x89   :  { %v48_v22 = vadd.f32 %v114_v20, %v47_v21 }
  0x8b   :  { %v52_v23 = vmul.f32 0.044715, %v48_v22  ;;  %v51_v30 = vmul.f32 0.5, %v48_v22 }
  0x8d   :  { %v53_v24 = vmul.f32 %v52_v23, %v48_v22 }
  0x8f   :  { %v54_v25 = vmul.f32 %v53_v24, %v48_v22 }
  0x90   :  { %v49_v26 = vpop.f32.mrf.mxu0 }
  0x91   :  { %v55_v27 = vadd.f32 %v54_v25, %v48_v22 }
  0x93   :  { %v56_v28 = vmul.f32 0.7978846, %v55_v27 }
  0x95   :  { %116 = vtanh.f32 %v56_v28 }
  0x9b   :  { %v117_v29 = vpop.eup %116 }
  0x9c   :  { %v58_v31 = vadd.f32 1.0, %v117_v29 }
  0x9e   :  { %v59_v32 = vmul.f32 %v58_v31, %v51_v30 }
  0xa0   :  { %v72_v33 = vpack.c.bf16 %v59_v32, %v59_v32 }
  0xa2   :  { %112 = vmatmul.msk.bf16.vlgmr.msra.gmra.mxu1 %vm77_vm1, %v72_v33 }
 0x11f   :  { %v90_v35 = vpop.f32.mrf.mxu1 }
 0x120   :  { %v91_v36 = vadd.f32 %v115_v34, %v90_v35 }
 0x122   :  { %94 = vst.msk [vmem:[#allocation2] sm:$0xff] %vm34_vm0, %v91_v36 }
 0x123   :  { %105 = dma.vmem_to_hbm [thread:$0]  %s101_s20, 128, %s103_s23, [#allocation3]  }
 0x127   :  { %v92_v37 = vpop.f32.mrf.mxu1 }
 0x128   :  { %142 = dma.done.wait [#allocation3], 128  }
 0x129   :  { %143 = vsyncadd [#allocation3], 4294967168 }
 0x12a   :  { %110 = vsyncpa [#allocation3], 1 }

</bundles_post_ra>
